<compile_context>
chip_gen: v7x
topology: tpu7x:2x2x1
jax: 0.10.0
libtpu: 0.0.40
codegen_flags: <defaults>
</compile_context>

<pallas_src>
import jax
import jax.numpy as jnp
from jax.experimental import pallas as pl
from jax.experimental.pallas import tpu as pltpu


def ffnn_kernel(x_ref, w1_ref, b1_ref, w2_ref, b2_ref, w3_ref, b3_ref, o_ref):
    # x: (TM, D_in) f32 or bf16; w1: (D_in, H) bf16; b1: (1, H) f32 (BN folded)
    x = x_ref[...]
    if x.dtype != jnp.bfloat16:           # no-op path if caller already supplies bf16
        x = x.astype(jnp.bfloat16)

    # Layer 1: fused Linear+BatchNorm -> ReLU (bf16 MXU, f32 accumulate)
    h = jnp.dot(x, w1_ref[...], preferred_element_type=jnp.float32) + b1_ref[...]
    h = jnp.maximum(h, 0.0)                                          # (TM, H) f32

    # Layer 2: fused Linear+BatchNorm -> ReLU
    h = jnp.dot(h.astype(jnp.bfloat16), w2_ref[...],
                preferred_element_type=jnp.float32) + b2_ref[...]
    h = jnp.maximum(h, 0.0)                                          # (TM, H) f32

    # Head: Linear(H, 1) as VPU multiply + lane reduction (no N=1 MXU matmul),
    # then Sigmoid (EUP). b3 rides the scalar path (SMEM).
    z = jnp.sum(h * w3_ref[...], axis=-1) + b3_ref[0]                # (TM,)
    o_ref[...] = jax.nn.sigmoid(z).reshape(1, -1)                    # (1, TM) lane-dense


def _choose_tiling(B, max_tm=4096):
    """Pick (num_tiles, tile_rows). Tiles are 8-aligned; multi-tile tiles are 128-aligned
    so the lane-dense (1, tm) output blocks satisfy the (8,128) BlockSpec constraint."""
    if B <= 512:
        tm = max(8, ((B + 7) // 8) * 8)
        n = 1
    else:
        n = max(2, (B + max_tm - 1) // max_tm)      # >=2 tiles so v7x's 2nd TC has work
        per = (B + n - 1) // n
        tm = ((per + 127) // 128) * 128
    return n, tm


def feedforward_nn(x, folded_params):
    """x: (B, D_in) f32 or bf16, folded_params from fold_params(). Returns (B,) f32."""
    (w1, b1, w2, b2, w3, b3) = folded_params
    B, D_in = x.shape
    H = w1.shape[1]

    n_tiles, tm = _choose_tiling(B)
    b_out = n_tiles * tm  # padded *output* lanes only -- x itself is never copied/padded

    const2 = lambda i: (0, 0)  # weights/biases: same block every grid step (VMEM-resident)

    out = pl.pallas_call(
        ffnn_kernel,
        out_shape=jax.ShapeDtypeStruct((1, b_out), jnp.float32),
        grid=(n_tiles,),
        in_specs=[
            pl.BlockSpec((tm, D_in), lambda i: (i, 0)),              # x (batch-tiled, ragged tail OK)
            pl.BlockSpec((D_in, H), const2),                         # W1' bf16
            pl.BlockSpec((1, H), const2),                            # b1' f32
            pl.BlockSpec((H, H), const2),                            # W2' bf16
            pl.BlockSpec((1, H), const2),                            # b2' f32
            pl.BlockSpec((1, H), const2),                            # w3 row f32
            pl.BlockSpec(memory_space=pltpu.MemorySpace.SMEM),       # b3 scalar
        ],
        out_specs=pl.BlockSpec((1, tm), lambda i: (0, i)),           # lane-dense output
        compiler_params=pltpu.CompilerParams(
            dimension_semantics=("parallel",),
            vmem_limit_bytes=32 * 1024 * 1024,
        ),
    )(x, w1, b1, w2, b2, w3, b3)

    return out[0, :B]  # squeeze(-1) + drop padded output lanes


def init_params(key, input_dim, hidden_size=128):
    """PyTorch-style raw params: Linear weights/biases + BatchNorm gamma/beta/running stats."""
    ks = jax.random.split(key, 16)

    def linear(kw, kb, fan_in, fan_out):
        bound = 1.0 / jnp.sqrt(fan_in)
        w = jax.random.uniform(kw, (fan_in, fan_out), jnp.float32, -bound, bound)
        b = jax.random.uniform(kb, (1, fan_out), jnp.float32, -bound, bound)
        return w, b

    def bn(kg, kb, km, kv, n):
        gamma = 1.0 + 0.1 * jax.random.normal(kg, (1, n), jnp.float32)
        beta = 0.1 * jax.random.normal(kb, (1, n), jnp.float32)
        running_mean = 0.1 * jax.random.normal(km, (1, n), jnp.float32)
        running_var = 1.0 + 0.1 * jax.random.uniform(kv, (1, n), jnp.float32)
        return (gamma, beta, running_mean, running_var)

    w1, b1 = linear(ks[0], ks[1], input_dim, hidden_size)
    bn1 = bn(ks[2], ks[3], ks[4], ks[5], hidden_size)
    w2, b2 = linear(ks[6], ks[7], hidden_size, hidden_size)
    bn2 = bn(ks[8], ks[9], ks[10], ks[11], hidden_size)
    w3, b3 = linear(ks[12], ks[13], hidden_size, 1)
    return (w1, b1, bn1, w2, b2, bn2, w3, b3)


def fold_params(raw, eps=1e-5):
    """Fold eval-mode BatchNorm + Linear bias into the weights; cast big weights to bf16."""
    (w1, b1, (g1, be1, m1, v1), w2, b2, (g2, be2, m2, v2), w3, b3) = raw
    s1 = g1 / jnp.sqrt(v1 + eps)
    t1 = be1 - m1 * s1
    s2 = g2 / jnp.sqrt(v2 + eps)
    t2 = be2 - m2 * s2
    w1f = (w1 * s1).astype(jnp.bfloat16)         # (D_in, H)
    b1f = (b1 * s1 + t1).astype(jnp.float32)     # (1, H)
    w2f = (w2 * s2).astype(jnp.bfloat16)         # (H, H)
    b2f = (b2 * s2 + t2).astype(jnp.float32)     # (1, H)
    w3f = w3.reshape(1, -1).astype(jnp.float32)  # (1, H) head weights as a lane row
    b3f = b3.reshape((1,)).astype(jnp.float32)   # (1,) SMEM scalar
    return (w1f, b1f, w2f, b2f, w3f, b3f)


def reference_forward(x, raw, eps=1e-5):
    """Pure-f32 JAX reference of the original module semantics (eval mode)."""
    (w1, b1, (g1, be1, m1, v1), w2, b2, (g2, be2, m2, v2), w3, b3) = raw
    h = x @ w1 + b1
    h = (h - m1) / jnp.sqrt(v1 + eps) * g1 + be1
    h = jnp.maximum(h, 0.0)
    h = h @ w2 + b2
    h = (h - m2) / jnp.sqrt(v2 + eps) * g2 + be2
    h = jnp.maximum(h, 0.0)
    return jax.nn.sigmoid(h @ w3 + b3)[:, 0]


def reference_forward_folded(x, folded):
    """Pure-JAX mirror of the kernel math (folded weights, bf16 matmul, f32 accumulate)."""
    (w1, b1, w2, b2, w3, b3) = folded
    h = jnp.dot(x.astype(jnp.bfloat16), w1, preferred_element_type=jnp.float32) + b1
    h = jnp.maximum(h, 0.0)
    h = jnp.dot(h.astype(jnp.bfloat16), w2, preferred_element_type=jnp.float32) + b2
    h = jnp.maximum(h, 0.0)
    z = jnp.sum(h * w3, axis=-1) + b3[0]
    return jax.nn.sigmoid(z)


if __name__ == "__main__":
    key = jax.random.PRNGKey(0)
    k_x, k_p, k_x2 = jax.random.split(key, 3)

    batch, input_dim, hidden = 8, 32, 128
    x = jax.random.normal(k_x, (batch, input_dim), jnp.float32)
    raw_params = init_params(k_p, input_dim, hidden)
    folded_params = fold_params(raw_params)

    out = feedforward_nn(x, folded_params)
    out = jax.block_until_ready(out)
    assert out.shape == (batch,)

    # Same-math check (folded/bf16 computation, pure JAX).
    ref_folded = reference_forward_folded(x, folded_params)
    assert jnp.allclose(out, ref_folded, atol=5e-3, rtol=5e-3)

    # Semantics check vs the full-precision eval-mode module (loose: bf16 weights).
    ref_f32 = reference_forward(x, raw_params)
    assert jnp.allclose(out, ref_f32, atol=5e-2, rtol=5e-2)

    # Exercise the multi-tile path (>=2 grid steps, "parallel" batch axis).
    batch2 = 1024
    x2 = jax.random.normal(k_x2, (batch2, input_dim), jnp.float32)
    out2 = jax.block_until_ready(feedforward_nn(x2, folded_params))
    assert out2.shape == (batch2,)
    ref2 = reference_forward_folded(x2, folded_params)
    assert jnp.allclose(out2, ref2, atol=5e-3, rtol=5e-3)

    print("KERNEL_OK")
</pallas_src>

<mosaic_0001>
module attributes {stable_mosaic.version = 11 : i64} {
  func.func @ffnn_kernel(%arg0: i32, %arg1: memref<8x32xf32, #tpu.memory_space<vmem>>, %arg2: memref<32x128xbf16, #tpu.memory_space<vmem>>, %arg3: memref<1x128xf32, #tpu.memory_space<vmem>>, %arg4: memref<128x128xbf16, #tpu.memory_space<vmem>>, %arg5: memref<1x128xf32, #tpu.memory_space<vmem>>, %arg6: memref<1x128xf32, #tpu.memory_space<vmem>>, %arg7: memref<1xf32, #tpu.memory_space<smem>>, %arg8: memref<1x8xf32, #tpu.memory_space<vmem>>) attributes {dimension_semantics = [#tpu.dimension_semantics<parallel>], iteration_bounds = array<i64: 1>, scalar_prefetch = 0 : i64, scratch_operands = 0 : i64, tpu.core_type = #tpu.core_type<tc>, window_params = [{transform_indices = @transform_0, window_bounds = array<i64: 8, 32>}, {pipeline_mode = #tpu.pipeline_mode<synchronous>, transform_indices = @transform_1, window_bounds = array<i64: 32, 128>}, {pipeline_mode = #tpu.pipeline_mode<synchronous>, transform_indices = @transform_2, window_bounds = array<i64: 1, 128>}, {pipeline_mode = #tpu.pipeline_mode<synchronous>, transform_indices = @transform_3, window_bounds = array<i64: 128, 128>}, {pipeline_mode = #tpu.pipeline_mode<synchronous>, transform_indices = @transform_4, window_bounds = array<i64: 1, 128>}, {pipeline_mode = #tpu.pipeline_mode<synchronous>, transform_indices = @transform_5, window_bounds = array<i64: 1, 128>}, {transform_indices = @transform_6, window_bounds = array<i64: 1>}, {transform_indices = @transform_7, window_bounds = array<i64: 1, 8>}]} {
    %c0 = arith.constant 0 : index
    %c0_0 = arith.constant 0 : index
    %0 = vector.load %arg1[%c0, %c0_0] : memref<8x32xf32, #tpu.memory_space<vmem>>, vector<8x32xf32>
    %1 = arith.truncf %0 : vector<8x32xf32> to vector<8x32xbf16>
    %c0_1 = arith.constant 0 : index
    %c0_2 = arith.constant 0 : index
    %2 = vector.load %arg2[%c0_1, %c0_2] : memref<32x128xbf16, #tpu.memory_space<vmem>>, vector<32x128xbf16>
    %cst = arith.constant dense<0.000000e+00> : vector<8x128xf32>
    %3 = tpu.matmul %1, %2, %cst {dimension_numbers = #tpu.dot_dimension_numbers<[1], [0], [0], [1], [0, 0, 1, 1], [], []>} : vector<8x32xbf16>, vector<32x128xbf16>, vector<8x128xf32> -> vector<8x128xf32>
    %c0_3 = arith.constant 0 : index
    %c0_4 = arith.constant 0 : index
    %4 = vector.load %arg3[%c0_3, %c0_4] : memref<1x128xf32, #tpu.memory_space<vmem>>, vector<1x128xf32>
    %5 = vector.broadcast %4 : vector<1x128xf32> to vector<8x128xf32>
    %6 = arith.addf %3, %5 : vector<8x128xf32>
    %cst_5 = arith.constant 0.000000e+00 : f32
    %7 = vector.broadcast %cst_5 : f32 to vector<8x128xf32>
    %8 = arith.maximumf %6, %7 : vector<8x128xf32>
    %9 = arith.truncf %8 : vector<8x128xf32> to vector<8x128xbf16>
    %c0_6 = arith.constant 0 : index
    %c0_7 = arith.constant 0 : index
    %10 = vector.load %arg4[%c0_6, %c0_7] : memref<128x128xbf16, #tpu.memory_space<vmem>>, vector<128x128xbf16>
    %cst_8 = arith.constant dense<0.000000e+00> : vector<8x128xf32>
    %11 = tpu.matmul %9, %10, %cst_8 {dimension_numbers = #tpu.dot_dimension_numbers<[1], [0], [0], [1], [0, 0, 1, 1], [], []>} : vector<8x128xbf16>, vector<128x128xbf16>, vector<8x128xf32> -> vector<8x128xf32>
    %c0_9 = arith.constant 0 : index
    %c0_10 = arith.constant 0 : index
    %12 = vector.load %arg5[%c0_9, %c0_10] : memref<1x128xf32, #tpu.memory_space<vmem>>, vector<1x128xf32>
    %13 = vector.broadcast %12 : vector<1x128xf32> to vector<8x128xf32>
    %14 = arith.addf %11, %13 : vector<8x128xf32>
    %cst_11 = arith.constant 0.000000e+00 : f32
    %15 = vector.broadcast %cst_11 : f32 to vector<8x128xf32>
    %16 = arith.maximumf %14, %15 : vector<8x128xf32>
    %c0_12 = arith.constant 0 : index
    %c0_13 = arith.constant 0 : index
    %17 = vector.load %arg6[%c0_12, %c0_13] : memref<1x128xf32, #tpu.memory_space<vmem>>, vector<1x128xf32>
    %18 = vector.broadcast %17 : vector<1x128xf32> to vector<8x128xf32>
    %19 = arith.mulf %16, %18 : vector<8x128xf32>
    %cst_14 = arith.constant dense<0.000000e+00> : vector<8xf32>
    %20 = vector.multi_reduction <add>, %19, %cst_14 [1] : vector<8x128xf32> to vector<8xf32>
    %c0_15 = arith.constant 0 : index
    %21 = memref.load %arg7[%c0_15] : memref<1xf32, #tpu.memory_space<smem>>
    %22 = vector.broadcast %21 : f32 to vector<8xf32>
    %23 = arith.addf %20, %22 : vector<8xf32>
    %24 = arith.negf %23 : vector<8xf32>
    %25 = math.exp %24 : vector<8xf32>
    %cst_16 = arith.constant 1.000000e+00 : f32
    %26 = vector.broadcast %cst_16 : f32 to vector<8xf32>
    %27 = arith.addf %26, %25 : vector<8xf32>
    %28 = arith.divf %26, %27 : vector<8xf32>
    %29 = vector.shape_cast %28 : vector<8xf32> to vector<1x8xf32>
    %c0_17 = arith.constant 0 : index
    %c0_18 = arith.constant 0 : index
    %30 = vector.load %arg8[%c0_17, %c0_18] : memref<1x8xf32, #tpu.memory_space<vmem>>, vector<1x8xf32>
    tpu.vector_store %arg8[%c0_17, %c0_18], %29 {strides = array<i32>} : memref<1x8xf32, #tpu.memory_space<vmem>>, vector<1x8xf32>,
    return
  }
  func.func @transform_0(%arg0: i32) -> (i32, i32) {
    %c0_i32 = arith.constant 0 : i32
    %c0_i32_0 = arith.constant 0 : i32
    return %arg0, %c0_i32 : i32, i32
  }
  func.func @transform_1(%arg0: i32) -> (i32, i32) {
    %c0_i32 = arith.constant 0 : i32
    %c0_i32_0 = arith.constant 0 : i32
    %c0_i32_1 = arith.constant 0 : i32
    return %c0_i32, %c0_i32_0 : i32, i32
  }
  func.func @transform_2(%arg0: i32) -> (i32, i32) {
    %c0_i32 = arith.constant 0 : i32
    %c0_i32_0 = arith.constant 0 : i32
    %c0_i32_1 = arith.constant 0 : i32
    return %c0_i32, %c0_i32_0 : i32, i32
  }
  func.func @transform_3(%arg0: i32) -> (i32, i32) {
    %c0_i32 = arith.constant 0 : i32
    %c0_i32_0 = arith.constant 0 : i32
    %c0_i32_1 = arith.constant 0 : i32
    return %c0_i32, %c0_i32_0 : i32, i32
  }
  func.func @transform_4(%arg0: i32) -> (i32, i32) {
    %c0_i32 = arith.constant 0 : i32
    %c0_i32_0 = arith.constant 0 : i32
    %c0_i32_1 = arith.constant 0 : i32
    return %c0_i32, %c0_i32_0 : i32, i32
  }
  func.func @transform_5(%arg0: i32) -> (i32, i32) {
    %c0_i32 = arith.constant 0 : i32
    %c0_i32_0 = arith.constant 0 : i32
    %c0_i32_1 = arith.constant 0 : i32
    return %c0_i32, %c0_i32_0 : i32, i32
  }
  func.func @transform_6(%arg0: i32) -> i32 {
    %c0_i32 = arith.constant 0 : i32
    %c0_i32_0 = arith.constant 0 : i32
    return %c0_i32 : i32
  }
  func.func @transform_7(%arg0: i32) -> (i32, i32) {
    %c0_i32 = arith.constant 0 : i32
    %c0_i32_0 = arith.constant 0 : i32
    return %c0_i32, %arg0 : i32, i32
  }
}

</mosaic_0001>

<bundles_post_ra>
// kernel: tpu_custom_call.1
= control target key start
LH: loop header
LB: loop body
LE: loop exit
PB: predicated region body
PF: predicated region fallthrough
CT: control target
= control target key end

     0   :  { %13 = vsyncpa [#allocation4], 0  ;;  %s581_s0 = inlined_call_operand.hbm [shape: f32[8,32], index: 0, kind: input, shape index: {}]   ;;  %s582_s1 = inlined_call_operand.hbm [shape: bf16[32,128], index: 1, kind: input, shape index: {}]   ;;  %s583_s2 = inlined_call_operand.vmem [shape: f32[1,128], index: 2, kind: input, shape index: {}]   ;;  %s584_s3 = inlined_call_operand.hbm [shape: bf16[128,128], index: 3, kind: input, shape index: {}]   ;;  %s585_s4 = inlined_call_operand.vmem [shape: f32[1,128], index: 4, kind: input, shape index: {}]   ;;  %s586_s5 = inlined_call_operand.vmem [shape: f32[1,128], index: 5, kind: input, shape index: {}]   ;;  %s587_s6 = inlined_call_operand.<no memory space> [shape: f32[1], index: 6, kind: input, shape index: {}]   ;;  %s588_s7 = inlined_call_operand.hbm [shape: f32[1,8], index: 7, kind: output, shape index: {}]  }
   0x1   :  { %14 = vsyncpa [#allocation7], 0 }
   0x2   :  { %15 = vsyncpa [#allocation5], 0  ;;  %s467_s24 = smov [#allocation6]   ;;  %s373_s28 = scalar_lea.hbm %s582_s1, 256 }
   0x3   :  { %s31_s25 = sshll.u32 %s467_s24, 4  ;;  %p374_p0 = scmp.ne.s32.totalorder %s582_s1, %s373_s28  ;;  %s32_s25 = int_to_ptr.vmem [resolvable:$true] %s31_s25 }
   0x4   :  { %p377_p1 = scmp.lt.u32.totalorder %s373_s28, %s582_s1 }
   0x6   :  { %p379_p2 = pnand %p377_p1, %p374_p0 }
   0x8   :  { %382 = shalt.err (!%p379_p2)
}
   0x9   :  { %s383_s10 = scalar_lea.vmem %s32_s25, 256  ;;  %p388_p4 = scmp.lt.s32.totalorder %s32_s25, %s32_s25 }
   0xa   :  { %p384_p3 = scmp.ne.s32.totalorder %s32_s25, %s383_s10  ;;  %p389_p5 = scmp.lt.s32.totalorder %s383_s10, %s383_s10 }
   0xc   :  { %p390_p6 = por %p389_p5, %p388_p4 }
   0xe   :  { %p391_p7 = pnand %p390_p6, %p384_p3 }
  0x10   :  { %394 = shalt.err (!%p391_p7)
}
  0x11   :  { %s468_s11 = smov 64   ;;  %s469_s12 = smov 4  }
  0x12   :  { %37 = dma.hbm_to_vmem [thread:$0]  %s582_s1, 256, %s32_s25, [#allocation7], %s468_s11, %s468_s11, %s469_s12  }
  0x13   :  { %s470_s15 = smov [#allocation3]   ;;  %s471_s17 = smov [#allocation8]  }
  0x14   :  { %s22_s16 = sshll.u32 %s470_s15, 4  ;;  %s45_s18 = sshll.u32 %s471_s17, 4  ;;  %s23_s16 = int_to_ptr.vmem [resolvable:$true] %s22_s16  ;;  %s46_s18 = int_to_ptr.vmem [resolvable:$true] %s45_s18 }
  0x15   :  { %s395_s21 = scalar_lea.hbm %s581_s0, 128 }
  0x16   :  { %p396_p8 = scmp.ne.s32.totalorder %s581_s0, %s395_s21  ;;  %p399_p9 = scmp.lt.u32.totalorder %s395_s21, %s581_s0 }
  0x18   :  { %p401_p10 = pnand %p399_p9, %p396_p8 }
  0x1a   :  { %404 = shalt.err (!%p401_p10)
}
  0x1b   :  { %s405_s1 = scalar_lea.vmem %s23_s16, 128  ;;  %p410_p12 = scmp.lt.s32.totalorder %s23_s16, %s23_s16 }
  0x1c   :  { %p406_p11 = scmp.ne.s32.totalorder %s23_s16, %s405_s1  ;;  %p411_p13 = scmp.lt.s32.totalorder %s405_s1, %s405_s1 }
  0x1e   :  { %p412_p0 = por %p411_p13, %p410_p12 }
  0x20   :  { %p413_p1 = pnand %p412_p0, %p406_p11 }
  0x22   :  { %416 = shalt.err (!%p413_p1)
}
  0x23   :  { %25 = dma.hbm_to_vmem [thread:$0]  %s581_s0, 128, %s23_s16, [#allocation4]  }
  0x24   :  { %s417_s30 = scalar_lea.hbm %s584_s3, 1024 }
  0x25   :  { %p418_p2 = scmp.ne.s32.totalorder %s584_s3, %s417_s30  ;;  %p421_p3 = scmp.lt.u32.totalorder %s417_s30, %s584_s3 }
  0x27   :  { %p423_p4 = pnand %p421_p3, %p418_p2 }
  0x29   :  { %426 = shalt.err (!%p423_p4)
}
  0x2a   :  { %s427_s14 = scalar_lea.vmem %s46_s18, 1024  ;;  %p432_p6 = scmp.lt.s32.totalorder %s46_s18, %s46_s18 }
  0x2b   :  { %p428_p5 = scmp.ne.s32.totalorder %s46_s18, %s427_s14  ;;  %p433_p7 = scmp.lt.s32.totalorder %s427_s14, %s427_s14 }
  0x2d   :  { %p434_p8 = por %p433_p7, %p432_p6 }
  0x2f   :  { %p435_p9 = pnand %p434_p8, %p428_p5 }
  0x31   :  { %438 = shalt.err (!%p435_p9)
}
  0x32   :  { %51 = dma.hbm_to_vmem [thread:$0]  %s584_s3, 1024, %s46_s18, [#allocation7], %s468_s11, %s468_s11, %s469_s12  }
  0x33   :  { %461 = dma.done.wait [#allocation4], 128  }
  0x34   :  { %462 = vsyncadd [#allocation4], 4294967168 }
  0x35   :  { %463 = dma.done.wait [#allocation7], 1280  }
  0x36   :  { %464 = vsyncadd [#allocation7], 4294966016  ;;  %v472_v0 = vmov 0.0   ;;  %vm473_vm0 = vmmov 0   ;;  %v359_v1 = vld [vmem:[#allocation6] sm:$0xff]   ;;  %v360_v2 = vld [vmem:[#allocation6 + $0x8] sm:$0xff]   ;;  %v262_v30 = vstv %s587_s6  ;;  %v271_v36 = vlaneseq }
  0x37   :  { %323 = vmatprep.subr.bf16.mxu0 %v472_v0  ;;  %327 = vmatprep.mubr.msk.bf16.mxu0 %vm473_vm0, %v472_v0  ;;  %v68_v3 = vld [vmem:[#allocation3] sm:$0xff]  ;;  %v361_v4 = vld [vmem:[#allocation8] sm:$0xff]   ;;  %vm93_vm1 = vcmask 261120   ;;  %v363_v7 = vld [vmem:[#allocation8 + $0x10] sm:$0xff]   ;;  %vm278_vm2 = vcmask 57344  }
  0x38   :  { %331 = vmatprep.subr.bf16.mxu1 %v472_v0  ;;  %347 = vmatprep.mubr.msk.bf16.mxu1 %vm473_vm0, %v472_v0  ;;  %v69_v5 = vpack.c.bf16 %v68_v3, %v68_v3  ;;  %v362_v6 = vld [vmem:[#allocation8 + $0x8] sm:$0xff]   ;;  %v364_v8 = vld [vmem:[#allocation8 + $0x18] sm:$0xff]   ;;  %v365_v9 = vld [vmem:[#allocation8 + $0x20] sm:$0xff]   ;;  %v272_v37 = vand.u32 127, %v271_v36  ;;  %v274_v38 = vshrl.u32 %v271_v36, 7 }
  0x39   :  { %324 = vmatpush3.bf16.msra.mxu0 %v359_v1  ;;  %332 = vmatpush3.bf16.msra.mxu1 %v361_v4  ;;  %v366_v10 = vld [vmem:[#allocation8 + $0x28] sm:$0xff]   ;;  %v367_v11 = vld [vmem:[#allocation8 + $0x30] sm:$0xff]   ;;  %v368_v12 = vld [vmem:[#allocation8 + $0x38] sm:$0xff]  }
  0x3a   :  { %325 = vmatprep.subr.bf16.mxu0 %v472_v0  ;;  %333 = vmatprep.subr.bf16.mxu1 %v472_v0  ;;  %v296_v13 = vld [vmem:[%s583_s2] ss:$0 sm:$0xff]  ;;  %v275_v39 = vsub.s32 %v272_v37, %v274_v38 }
  0x3b   :  { %v300_v21 = vld [vmem:[%s585_s4] ss:$0 sm:$0xff]  ;;  %s474_s4 = smov [#allocation9]  }
  0x3c   :  { %v309_v26 = vld [vmem:[%s586_s5] ss:$0 sm:$0xff]  ;;  %s286_s5 = sshll.u32 %s474_s4, 4  ;;  %s287_s5 = int_to_ptr.vmem [resolvable:$true] %s286_s5 }
  0x3d   :  { %326 = vmatpush3.bf16.msra.mxu0 %v360_v2  ;;  %334 = vmatpush3.bf16.msra.mxu1 %v362_v6  ;;  %s439_s20 = scalar_lea.vmem %s287_s5, 16  ;;  %s443_s6 = scalar_lea.vmem %s287_s5, 32 }
  0x3e   :  { %335 = vmatprep.subr.bf16.mxu1 %v472_v0  ;;  %p440_p10 = scmp.ne.s32.totalorder %s287_s5, %s439_s20  ;;  %p444_p11 = scmp.lt.s32.totalorder %s287_s5, %s287_s5 }
  0x3f   :  { %p445_p12 = scmp.lt.s32.totalorder %s443_s6, %s439_s20 }
  0x40   :  { %328 = vmatmul.mubr.msk.bf16.vlgmr.msra.gmra.mrb[0].mxu0 %vm93_vm1, %v69_v5 }
  0x41   :  { %336 = vmatpush3.bf16.msra.mxu1 %v363_v7  ;;  %p446_p13 = por %p445_p12, %p444_p11 }
  0x42   :  { %337 = vmatprep.subr.bf16.mxu1 %v472_v0 }
  0x43   :  { %p447_p0 = pnand %p446_p13, %p440_p10 }
  0x45   :  { %338 = vmatpush3.bf16.msra.mxu1 %v364_v8 }
  0x46   :  { %339 = vmatprep.subr.bf16.mxu1 %v472_v0 }
  0x49   :  { %340 = vmatpush3.bf16.msra.mxu1 %v365_v9 }
  0x4a   :  { %341 = vmatprep.subr.bf16.mxu1 %v472_v0 }
  0x4d   :  { %342 = vmatpush3.bf16.msra.mxu1 %v366_v10 }
  0x4e   :  { %343 = vmatprep.subr.bf16.mxu1 %v472_v0 }
  0x51   :  { %344 = vmatpush3.bf16.msra.mxu1 %v367_v11 }
  0x52   :  { %345 = vmatprep.subr.bf16.mxu1 %v472_v0 }
  0x55   :  { %346 = vmatpush3.bf16.msra.mxu1 %v368_v12 }
 0x113   :  { %v131_v14 = vpop.f32.mrb[0].mxu0 }
 0x114   :  { %v132_v15 = vadd.f32 %v296_v13, %v131_v14  ;;  %v329_v16 = vpop.f32.mrb[1].mxu0 }
 0x115   :  { %v134_v17 = vpop.f32.mrb[2].mxu0 }
 0x116   :  { %v137_v18 = vmax.f32 %v132_v15, 0.0  ;;  %v330_v19 = vpop.f32.mrb[3].mxu0 }
 0x118   :  { %v138_v20 = vpack.c.bf16 %v137_v18, %v137_v18 }
 0x11a   :  { %348 = vmatmul.mubr.bf16.vlgmr.msra.gmra.mrb[0].mxu1 %v138_v20 }
 0x1ed   :  { %v244_v22 = vpop.f32.mrb[0].mxu1 }
 0x1ee   :  { %v245_v23 = vadd.f32 %v300_v21, %v244_v22  ;;  %v349_v24 = vpop.f32.mrb[1].mxu1 }
 0x1ef   :  { %v247_v25 = vpop.f32.mrb[2].mxu1 }
 0x1f0   :  { %v250_v27 = vmax.f32 %v245_v23, 0.0  ;;  %v350_v28 = vpop.f32.mrb[3].mxu1 }
 0x1f2   :  { %v258_v29 = vmul.f32 %v309_v26, %v250_v27 }
 0x1f4   :  { %259 = vadd.xlane.f32.xlu0 %v258_v29 }
 0x281   :  { %v260_v31 = vpop.xlane.xlu0 %259 }
 0x282   :  { %v263_v32 = vadd.f32 %v262_v30, %v260_v31 }
 0x284   :  { %v310_v33 = vmul.f32 -1.442695, %v263_v32 }
 0x286   :  { %369 = vpow2.f32 %v310_v33 }
 0x290   :  { %v370_v34 = vpop.eup %369 }
 0x291   :  { %v267_v35 = vadd.f32 1.0, %v370_v34 }
 0x293   :  { %371 = vrcp.f32 %v267_v35 }
 0x29d   :  { %v372_v40 = vpop.eup %371 }
 0x29e   :  { %v276_v41 = vrot.slane %v372_v40, %v275_v39 }
 0x2a0   :  { %279 = vst.msk [vmem:[#allocation9] sm:$0x1] %vm278_vm2, %v276_v41 }
 0x2a1   :  { %450 = shalt.err (!%p447_p0)
}
 0x2a2   :  { %s451_s23 = scalar_lea.hbm %s588_s7, 16 }
 0x2a3   :  { %p452_p1 = scmp.ne.s32.totalorder %s588_s7, %s451_s23  ;;  %p455_p2 = scmp.lt.u32.totalorder %s451_s23, %s588_s7 }
 0x2a5   :  { %p457_p3 = pnand %p455_p2, %p452_p1 }
 0x2a7   :  { %460 = shalt.err (!%p457_p3)
}
 0x2a8   :  { %289 = dma.vmem_to_hbm [thread:$0]  %s287_s5, 16, %s588_s7, [#allocation5]  }
 0x2a9   :  { %465 = dma.done.wait [#allocation5], 16  }
 0x2aa   :  { %466 = vsyncadd [#allocation5], 4294967280 }
 0x2ab   :  { %293 = vsyncpa [#allocation4], 1 }
 0x2ac   :  { %294 = vsyncpa [#allocation7], 1 }
 0x2ad   :  { %295 = vsyncpa [#allocation5], 1 }

</bundles_post_ra>
